<compile_context>
chip_gen: v7x
topology: tpu7x:2x2x1
jax: 0.10.0
libtpu: 0.0.40
codegen_flags: <defaults>
</compile_context>

<pallas_src>
import jax
import jax.numpy as jnp
from jax import lax
from jax.experimental import pallas as pl
from jax.experimental.pallas import tpu as pltpu


# ----------------------------- Pallas kernel ---------------------------------
def attention_kernel(x_ref, wcat_ref, wo_ref, gamma_ref, out_ref,
                     theta_s, phi_s, g_s):
    # x_ref    : (1, HW, C)   bf16, rows in window-major order (row = k*HWp + p)
    # wcat_ref : (C, C8+C8+C2) bf16   fused [theta | phi | g] conv1x1 weights (transposed)
    # wo_ref   : (C2, C)      bf16
    # gamma_ref: (1,) f32 in SMEM
    # out_ref  : (1, TQ, C)   f32     (q-tile of the output, same row order as x)
    # scratch  : theta_s (HW, C8) bf16, phi_s (HWp, C8) bf16, g_s (HWp, C2) bf16
    q = pl.program_id(1)
    HW = theta_s.shape[0]
    HWp, C8 = phi_s.shape
    C2 = g_s.shape[1]
    TQ = out_ref.shape[1]

    # ---- K/V side: fused projection + 2x2 max-pool, once per batch ----------
    @pl.when(q == 0)
    def _():
        x_all = x_ref[0]                                           # (HW, C) bf16
        proj = jnp.dot(x_all, wcat_ref[...],
                       preferred_element_type=jnp.float32)         # (HW, C8+C8+C2)
        theta_s[...] = proj[:, :C8].astype(jnp.bfloat16)
        pg = proj[:, C8:]                                          # (HW, C8+C2)
        # max_pool2d(conv1x1(x), 2) == elementwise max over the 4 window members,
        # which are the 4 contiguous row blocks of the window-major layout.
        pooled = jnp.maximum(
            jnp.maximum(pg[0 * HWp:1 * HWp], pg[1 * HWp:2 * HWp]),
            jnp.maximum(pg[2 * HWp:3 * HWp], pg[3 * HWp:4 * HWp]))  # (HWp, C8+C2)
        phi_s[...] = pooled[:, :C8].astype(jnp.bfloat16)
        g_s[...] = pooled[:, C8:].astype(jnp.bfloat16)

    # ---- query tile ----------------------------------------------------------
    qs = pl.multiple_of(q * TQ, TQ)
    x_q = x_ref[0, pl.ds(qs, TQ), :]                               # (TQ, C) bf16
    theta_q = theta_s[pl.ds(qs, TQ), :]                            # (TQ, C8) bf16

    # scores = theta . phi^T   (contract on C8)
    scores = lax.dot_general(theta_q, phi_s[...], (((1,), (1,)), ((), ())),
                             preferred_element_type=jnp.float32)   # (TQ, HWp) f32

    # softmax (f32), denominator reciprocal on the EUP slot
    m = jnp.max(scores, axis=-1, keepdims=True)
    e = jnp.exp(scores - m)
    beta = e * pl.reciprocal(jnp.sum(e, axis=-1, keepdims=True), approx=True)

    # o = conv1x1_o(beta @ g)
    o_mid = jnp.dot(beta.astype(jnp.bfloat16), g_s[...],
                    preferred_element_type=jnp.float32)            # (TQ, C2) f32
    o = jnp.dot(o_mid.astype(jnp.bfloat16), wo_ref[...],
                preferred_element_type=jnp.float32)                # (TQ, C)  f32

    out_ref[0] = gamma_ref[0] * o + x_q.astype(jnp.float32)


# ----------------------------- wrapper ---------------------------------------
def attention_pallas(x_nchw, w_theta, w_phi, w_g, w_o, gamma, *, tile_q=None):
    """x_nchw: (B, C, H, W) f32.  w_*: (out_ch, in_ch) conv1x1 weights."""
    B, C, H, W = x_nchw.shape
    assert H % 2 == 0 and W % 2 == 0 and C % 8 == 0
    HW, HWp = H * W, (H // 2) * (W // 2)
    C8, C2 = C // 8, C // 2
    CP = C8 + C8 + C2
    if tile_q is None:
        tile_q = min(HW, 1024)
    assert HW % tile_q == 0 and tile_q % 8 == 0
    n_q = HW // tile_q

    # Window-major row permutation: row index = (2*dh + dw) * HWp + (hp*(W//2) + wp).
    # Single bf16 copy of x (replaces the previous x_flat + x_win duplication).
    x_perm = (jnp.transpose(x_nchw, (0, 2, 3, 1))                  # (B,H,W,C)
              .reshape(B, H // 2, 2, W // 2, 2, C)
              .transpose(0, 2, 4, 1, 3, 5)                         # (B,2,2,Hp,Wp,C)
              .reshape(B, HW, C)
              .astype(jnp.bfloat16))

    # Fused [theta | phi | g] projection weight, bf16 for the MXU.
    w_cat = jnp.concatenate(
        [jnp.asarray(w_theta, jnp.float32).T,
         jnp.asarray(w_phi, jnp.float32).T,
         jnp.asarray(w_g, jnp.float32).T], axis=1).astype(jnp.bfloat16)   # (C, CP)
    wo_t = jnp.asarray(w_o, jnp.float32).T.astype(jnp.bfloat16)           # (C2, C)
    gamma_arr = jnp.asarray(gamma, jnp.float32).reshape(1)

    flops = 2 * B * (HW * C * CP + HW * HWp * C8 + HW * HWp * C2 + HW * C2 * C)
    bytes_accessed = (B * HW * C * 2 + (C * CP + C2 * C) * 2 + B * HW * C * 4 + 4)
    cost = pl.CostEstimate(flops=flops, transcendentals=B * HW * HWp,
                           bytes_accessed=bytes_accessed)

    out_perm = pl.pallas_call(
        attention_kernel,
        out_shape=jax.ShapeDtypeStruct((B, HW, C), jnp.float32),
        grid_spec=pltpu.PrefetchScalarGridSpec(
            num_scalar_prefetch=0,
            grid=(B, n_q),
            in_specs=[
                pl.BlockSpec((1, HW, C), lambda b, q: (b, 0, 0)),   # resident per b
                pl.BlockSpec((C, CP), lambda b, q: (0, 0)),
                pl.BlockSpec((C2, C), lambda b, q: (0, 0)),
                pl.BlockSpec(memory_space=pltpu.MemorySpace.SMEM),
            ],
            out_specs=pl.BlockSpec((1, tile_q, C), lambda b, q: (b, q, 0)),
            scratch_shapes=[
                pltpu.VMEM((HW, C8), jnp.bfloat16),     # theta
                pltpu.VMEM((HWp, C8), jnp.bfloat16),    # pooled phi
                pltpu.VMEM((HWp, C2), jnp.bfloat16),    # pooled g
            ],
        ),
        compiler_params=pltpu.CompilerParams(
            dimension_semantics=("parallel", "arbitrary"),
            vmem_limit_bytes=64 * 1024 * 1024),
        cost_estimate=cost,
    )(x_perm, w_cat, wo_t, gamma_arr)

    # Undo the window-major permutation and return NCHW f32.
    out = (out_perm.reshape(B, 2, 2, H // 2, W // 2, C)
           .transpose(0, 3, 1, 4, 2, 5)                            # (B,Hp,2,Wp,2,C)
           .reshape(B, H, W, C)
           .transpose(0, 3, 1, 2))
    return out


# -------------------------- pure-JAX reference --------------------------------
def attention_ref(x_nchw, w_theta, w_phi, w_g, w_o, gamma):
    B, C, H, W = x_nchw.shape
    theta = jnp.einsum('oc,bchw->bohw', w_theta, x_nchw)
    phi = jnp.einsum('oc,bchw->bohw', w_phi, x_nchw)
    g = jnp.einsum('oc,bchw->bohw', w_g, x_nchw)

    def pool(t):
        b, o, h, w = t.shape
        return t.reshape(b, o, h // 2, 2, w // 2, 2).max(axis=(3, 5))

    phi, g = pool(phi), pool(g)
    theta = theta.reshape(B, C // 8, H * W)
    phi = phi.reshape(B, C // 8, -1)
    g = g.reshape(B, C // 2, -1)
    beta = jax.nn.softmax(jnp.einsum('bct,bcp->btp', theta, phi), axis=-1)
    o_mid = jnp.einsum('bcp,btp->bct', g, beta)
    o = jnp.einsum('oc,bct->bot', w_o, o_mid).reshape(B, C, H, W)
    return gamma * o + x_nchw


# ------------------------ deterministic parameters -----------------------------
def spectral_normalize(w, n_iter=30):
    """Approximate nn.utils.spectral_norm: divide by largest singular value."""
    u = jnp.ones((w.shape[0],), jnp.float32)
    v = jnp.ones((w.shape[1],), jnp.float32)
    for _ in range(n_iter):
        v = w.T @ u
        v = v / (jnp.linalg.norm(v) + 1e-12)
        u = w @ v
        u = u / (jnp.linalg.norm(u) + 1e-12)
    sigma = u @ (w @ v)
    return w / sigma


def make_params(key, channels):
    # conv1x1 weights as 2-D (out_ch, in_ch); spectral-norm-scaled.
    # TODO(synk): PyTorch uses orthogonal_ init; scaled Gaussian + spectral norm
    # is used here since the forward semantics do not depend on the init scheme.
    k1, k2, k3, k4 = jax.random.split(key, 4)
    c8, c2 = channels // 8, channels // 2
    scale = 1.0 / jnp.sqrt(channels)
    w_theta = spectral_normalize(jax.random.normal(k1, (c8, channels)) * scale)
    w_phi = spectral_normalize(jax.random.normal(k2, (c8, channels)) * scale)
    w_g = spectral_normalize(jax.random.normal(k3, (c2, channels)) * scale)
    w_o = spectral_normalize(jax.random.normal(k4, (channels, c2)) * scale)
    gamma = jnp.float32(0.0)   # module initializes gamma to 0.0
    return w_theta, w_phi, w_g, w_o, gamma


# ---------------------------------- main ---------------------------------------
if __name__ == "__main__":
    key = jax.random.PRNGKey(0)
    kx, kp = jax.random.split(key)

    B, C, H, W = 2, 32, 16, 16
    x = jax.random.normal(kx, (B, C, H, W), dtype=jnp.float32)
    w_theta, w_phi, w_g, w_o, gamma = make_params(kp, C)

    # tile_q=64 -> 4 query tiles per batch: exercises the q-tiling + K/V scratch carry.
    out = attention_pallas(x, w_theta, w_phi, w_g, w_o, gamma, tile_q=64)
    out = jax.block_until_ready(out)
    ref = attention_ref(x, w_theta, w_phi, w_g, w_o, gamma)
    assert out.shape == (B, C, H, W)
    # bf16 matmul operands + approx reciprocal -> compare at bf16-level tolerance.
    assert jnp.allclose(out, ref, atol=3e-2, rtol=3e-2), \
        float(jnp.max(jnp.abs(out - ref)))

    # nonzero gamma exercises the full attention path
    out_nz = jax.block_until_ready(
        attention_pallas(x, w_theta, w_phi, w_g, w_o, jnp.float32(0.37), tile_q=64))
    ref_nz = attention_ref(x, w_theta, w_phi, w_g, w_o, jnp.float32(0.37))
    assert jnp.allclose(out_nz, ref_nz, atol=3e-2, rtol=3e-2), \
        float(jnp.max(jnp.abs(out_nz - ref_nz)))

    print("KERNEL_OK")
</pallas_src>

<mosaic_0001>
module attributes {stable_mosaic.version = 11 : i64} {
  func.func @attention_kernel(%arg0: i32, %arg1: i32, %arg2: memref<1x256x32xbf16, #tpu.memory_space<vmem>>, %arg3: memref<32x24xbf16, #tpu.memory_space<vmem>>, %arg4: memref<16x32xbf16, #tpu.memory_space<vmem>>, %arg5: memref<1xf32, #tpu.memory_space<smem>>, %arg6: memref<1x64x32xf32, #tpu.memory_space<vmem>>, %arg7: memref<256x4xbf16, #tpu.memory_space<vmem>>, %arg8: memref<64x4xbf16, #tpu.memory_space<vmem>>, %arg9: memref<64x16xbf16, #tpu.memory_space<vmem>>) attributes {dimension_semantics = [#tpu.dimension_semantics<parallel>, #tpu.dimension_semantics<arbitrary>], iteration_bounds = array<i64: 2, 4>, scalar_prefetch = 0 : i64, scratch_operands = 3 : i64, tpu.core_type = #tpu.core_type<tc>, window_params = [{transform_indices = @transform_0, window_bounds = array<i64: 1, 256, 32>}, {pipeline_mode = #tpu.pipeline_mode<synchronous>, transform_indices = @transform_1, window_bounds = array<i64: 32, 24>}, {pipeline_mode = #tpu.pipeline_mode<synchronous>, transform_indices = @transform_2, window_bounds = array<i64: 16, 32>}, {transform_indices = @transform_3, window_bounds = array<i64: 1>}, {transform_indices = @transform_4, window_bounds = array<i64: 1, 64, 32>}]} {
    %c0_i32 = arith.constant 0 : i32
    %0 = arith.cmpi eq, %arg1, %c0_i32 : i32
    %1 = arith.extui %0 : i1 to i32
    %c0_i32_0 = arith.constant 0 : i32
    %2 = arith.cmpi ne, %1, %c0_i32_0 : i32
    scf.if %2 {
      %c0_17 = arith.constant 0 : index
      %c0_18 = arith.constant 0 : index
      %c0_19 = arith.constant 0 : index
      %36 = vector.load %arg2[%c0_17, %c0_18, %c0_19] : memref<1x256x32xbf16, #tpu.memory_space<vmem>>, vector<1x256x32xbf16>
      %37 = vector.shape_cast %36 : vector<1x256x32xbf16> to vector<256x32xbf16>
      %c0_20 = arith.constant 0 : index
      %c0_21 = arith.constant 0 : index
      %38 = vector.load %arg3[%c0_20, %c0_21] : memref<32x24xbf16, #tpu.memory_space<vmem>>, vector<32x24xbf16>
      %cst_22 = arith.constant dense<0.000000e+00> : vector<256x24xf32>
      %39 = tpu.matmul %37, %38, %cst_22 {dimension_numbers = #tpu.dot_dimension_numbers<[1], [0], [0], [1], [0, 0, 1, 1], [], []>} : vector<256x32xbf16>, vector<32x24xbf16>, vector<256x24xf32> -> vector<256x24xf32>
      %40 = vector.extract_strided_slice %39 {offsets = [0, 0], sizes = [256, 4], strides = [1, 1]} : vector<256x24xf32> to vector<256x4xf32>
      %41 = arith.truncf %40 : vector<256x4xf32> to vector<256x4xbf16>
      %c0_23 = arith.constant 0 : index
      %c0_24 = arith.constant 0 : index
      %42 = vector.load %arg7[%c0_23, %c0_24] : memref<256x4xbf16, #tpu.memory_space<vmem>>, vector<256x4xbf16>
      tpu.vector_store %arg7[%c0_23, %c0_24], %41 {strides = array<i32>} : memref<256x4xbf16, #tpu.memory_space<vmem>>, vector<256x4xbf16>,
      %43 = vector.extract_strided_slice %39 {offsets = [0, 4], sizes = [256, 20], strides = [1, 1]} : vector<256x24xf32> to vector<256x20xf32>
      %44 = vector.extract_strided_slice %43 {offsets = [0, 0], sizes = [64, 20], strides = [1, 1]} : vector<256x20xf32> to vector<64x20xf32>
      %45 = vector.extract_strided_slice %43 {offsets = [64, 0], sizes = [64, 20], strides = [1, 1]} : vector<256x20xf32> to vector<64x20xf32>
      %46 = arith.maximumf %44, %45 : vector<64x20xf32>
      %47 = vector.extract_strided_slice %43 {offsets = [128, 0], sizes = [64, 20], strides = [1, 1]} : vector<256x20xf32> to vector<64x20xf32>
      %48 = vector.extract_strided_slice %43 {offsets = [192, 0], sizes = [64, 20], strides = [1, 1]} : vector<256x20xf32> to vector<64x20xf32>
      %49 = arith.maximumf %47, %48 : vector<64x20xf32>
      %50 = arith.maximumf %46, %49 : vector<64x20xf32>
      %51 = vector.extract_strided_slice %50 {offsets = [0, 0], sizes = [64, 4], strides = [1, 1]} : vector<64x20xf32> to vector<64x4xf32>
      %52 = arith.truncf %51 : vector<64x4xf32> to vector<64x4xbf16>
      %c0_25 = arith.constant 0 : index
      %c0_26 = arith.constant 0 : index
      %53 = vector.load %arg8[%c0_25, %c0_26] : memref<64x4xbf16, #tpu.memory_space<vmem>>, vector<64x4xbf16>
      tpu.vector_store %arg8[%c0_25, %c0_26], %52 {strides = array<i32>} : memref<64x4xbf16, #tpu.memory_space<vmem>>, vector<64x4xbf16>,
      %54 = vector.extract_strided_slice %50 {offsets = [0, 4], sizes = [64, 16], strides = [1, 1]} : vector<64x20xf32> to vector<64x16xf32>
      %55 = arith.truncf %54 : vector<64x16xf32> to vector<64x16xbf16>
      %c0_27 = arith.constant 0 : index
      %c0_28 = arith.constant 0 : index
      %56 = vector.load %arg9[%c0_27, %c0_28] : memref<64x16xbf16, #tpu.memory_space<vmem>>, vector<64x16xbf16>
      tpu.vector_store %arg9[%c0_27, %c0_28], %55 {strides = array<i32>} : memref<64x16xbf16, #tpu.memory_space<vmem>>, vector<64x16xbf16>,
    } else {
    }
    %c64_i32 = arith.constant 64 : i32
    %3 = arith.muli %arg1, %c64_i32 : i32
    %4 = tpu.assume_multiple %3, 64 : i32
    %c0 = arith.constant 0 : index
    %5 = arith.index_cast %4 : i32 to index
    %c0_1 = arith.constant 0 : index
    %6 = vector.load %arg2[%c0, %5, %c0_1] : memref<1x256x32xbf16, #tpu.memory_space<vmem>>, vector<1x64x32xbf16>
    %7 = vector.shape_cast %6 : vector<1x64x32xbf16> to vector<64x32xbf16>
    %8 = arith.index_cast %4 : i32 to index
    %c0_2 = arith.constant 0 : index
    %9 = vector.load %arg7[%8, %c0_2] : memref<256x4xbf16, #tpu.memory_space<vmem>>, vector<64x4xbf16>
    %c0_3 = arith.constant 0 : index
    %c0_4 = arith.constant 0 : index
    %10 = vector.load %arg8[%c0_3, %c0_4] : memref<64x4xbf16, #tpu.memory_space<vmem>>, vector<64x4xbf16>
    %cst = arith.constant dense<0.000000e+00> : vector<64x64xf32>
    %11 = tpu.matmul %9, %10, %cst {dimension_numbers = #tpu.dot_dimension_numbers<[1], [1], [0], [0], [0, 0, 1, 0], [], []>} : vector<64x4xbf16>, vector<64x4xbf16>, vector<64x64xf32> -> vector<64x64xf32>
    %cst_5 = arith.constant dense<0xFF800000> : vector<64xf32>
    %12 = vector.multi_reduction <maximumf>, %11, %cst_5 [1] : vector<64x64xf32> to vector<64xf32>
    %13 = vector.shape_cast %12 : vector<64xf32> to vector<64x1xf32>
    %14 = vector.broadcast %13 : vector<64x1xf32> to vector<64x64xf32>
    %15 = arith.subf %11, %14 : vector<64x64xf32>
    %16 = math.exp %15 : vector<64x64xf32>
    %cst_6 = arith.constant dense<0.000000e+00> : vector<64xf32>
    %17 = vector.multi_reduction <add>, %16, %cst_6 [1] : vector<64x64xf32> to vector<64xf32>
    %18 = vector.shape_cast %17 : vector<64xf32> to vector<64x1xf32>
    %19 = tpu.reciprocal %18 {approx = true} : vector<64x1xf32> -> vector<64x1xf32>
    %20 = vector.broadcast %19 : vector<64x1xf32> to vector<64x64xf32>
    %21 = arith.mulf %16, %20 : vector<64x64xf32>
    %22 = arith.truncf %21 : vector<64x64xf32> to vector<64x64xbf16>
    %c0_7 = arith.constant 0 : index
    %c0_8 = arith.constant 0 : index
    %23 = vector.load %arg9[%c0_7, %c0_8] : memref<64x16xbf16, #tpu.memory_space<vmem>>, vector<64x16xbf16>
    %cst_9 = arith.constant dense<0.000000e+00> : vector<64x16xf32>
    %24 = tpu.matmul %22, %23, %cst_9 {dimension_numbers = #tpu.dot_dimension_numbers<[1], [0], [0], [1], [0, 0, 1, 1], [], []>} : vector<64x64xbf16>, vector<64x16xbf16>, vector<64x16xf32> -> vector<64x16xf32>
    %25 = arith.truncf %24 : vector<64x16xf32> to vector<64x16xbf16>
    %c0_10 = arith.constant 0 : index
    %c0_11 = arith.constant 0 : index
    %26 = vector.load %arg4[%c0_10, %c0_11] : memref<16x32xbf16, #tpu.memory_space<vmem>>, vector<16x32xbf16>
    %cst_12 = arith.constant dense<0.000000e+00> : vector<64x32xf32>
    %27 = tpu.matmul %25, %26, %cst_12 {dimension_numbers = #tpu.dot_dimension_numbers<[1], [0], [0], [1], [0, 0, 1, 1], [], []>} : vector<64x16xbf16>, vector<16x32xbf16>, vector<64x32xf32> -> vector<64x32xf32>
    %c0_13 = arith.constant 0 : index
    %28 = memref.load %arg5[%c0_13] : memref<1xf32, #tpu.memory_space<smem>>
    %29 = vector.broadcast %28 : f32 to vector<64x32xf32>
    %30 = arith.mulf %29, %27 : vector<64x32xf32>
    %31 = arith.extf %7 : vector<64x32xbf16> to vector<64x32xf32>
    %32 = arith.addf %30, %31 : vector<64x32xf32>
    %c0_14 = arith.constant 0 : index
    %c0_15 = arith.constant 0 : index
    %c0_16 = arith.constant 0 : index
    %33 = vector.load %arg6[%c0_14, %c0_15, %c0_16] : memref<1x64x32xf32, #tpu.memory_space<vmem>>, vector<1x64x32xf32>
    %34 = vector.shape_cast %33 : vector<1x64x32xf32> to vector<64x32xf32>
    %35 = vector.shape_cast %32 : vector<64x32xf32> to vector<1x64x32xf32>
    tpu.vector_store %arg6[%c0_14, %c0_15, %c0_16], %35 {strides = array<i32>} : memref<1x64x32xf32, #tpu.memory_space<vmem>>, vector<1x64x32xf32>,
    return
  }
  func.func @transform_0(%arg0: i32, %arg1: i32) -> (i32, i32, i32) {
    %c0_i32 = arith.constant 0 : i32
    %c0_i32_0 = arith.constant 0 : i32
    %c0_i32_1 = arith.constant 0 : i32
    return %arg0, %c0_i32, %c0_i32_0 : i32, i32, i32
  }
  func.func @transform_1(%arg0: i32, %arg1: i32) -> (i32, i32) {
    %c0_i32 = arith.constant 0 : i32
    %c0_i32_0 = arith.constant 0 : i32
    %c0_i32_1 = arith.constant 0 : i32
    return %c0_i32, %c0_i32_0 : i32, i32
  }
  func.func @transform_2(%arg0: i32, %arg1: i32) -> (i32, i32) {
    %c0_i32 = arith.constant 0 : i32
    %c0_i32_0 = arith.constant 0 : i32
    %c0_i32_1 = arith.constant 0 : i32
    return %c0_i32, %c0_i32_0 : i32, i32
  }
  func.func @transform_3(%arg0: i32, %arg1: i32) -> i32 {
    %c0_i32 = arith.constant 0 : i32
    %c0_i32_0 = arith.constant 0 : i32
    return %c0_i32 : i32
  }
  func.func @transform_4(%arg0: i32, %arg1: i32) -> (i32, i32, i32) {
    %c0_i32 = arith.constant 0 : i32
    %c0_i32_0 = arith.constant 0 : i32
    return %arg0, %arg1, %c0_i32 : i32, i32, i32
  }
}

</mosaic_0001>

<bundles_post_ra>
// kernel: tpu_custom_call.1
= control target key start
LH: loop header
LB: loop body
LE: loop exit
PB: predicated region body
PF: predicated region fallthrough
CT: control target
= control target key end

     0   :  { %s2352_s0 = inlined_call_operand.hbm [shape: bf16[2,256,32], index: 0, kind: input, shape index: {}]   ;;  %s2353_s1 = inlined_call_operand.hbm [shape: bf16[32,24], index: 1, kind: input, shape index: {}]   ;;  %s2354_s2 = inlined_call_operand.hbm [shape: bf16[16,32], index: 2, kind: input, shape index: {}]   ;;  %s2355_s3 = inlined_call_operand.<no memory space> [shape: f32[1], index: 3, kind: input, shape index: {}]   ;;  %s2356_s4 = inlined_call_operand.hbm [shape: f32[2,256,32], index: 4, kind: output, shape index: {}]  }
   0x1   :  { %2368 = sst [smem:[#allocation20_spill]] %s2353_s1 }
   0x2   :  { %2369 = sst [smem:[#allocation21_spill]] %s2354_s2 }
   0x3   :  { %9 = sst [smem:[#allocation5]] %s2355_s3 }
   0x4   :  { %10 = vsyncpa [#allocation7], 0 }
   0x5   :  { %12 = vsyncpa [#allocation7 + $0x1], 0 }
   0x6   :  { %13 = vsyncpa [#allocation10], 0 }
   0x7   :  { %14 = vsyncpa [#allocation8], 0 }
   0x8   :  { %16 = vsyncpa [#allocation8 + $0x1], 0  ;;  %s1890_s17 = smov 0   ;;  %s1892_s18 = smov 0  }
   0x9   :  { %s1894_s19 = smov 0   ;;  %s1896_s20 = smov 0  }
   0xa   :  { %s1898_s21 = smov 0   ;;  %s1900_s22 = smov 0  }
   0xb   :  { %s1902_s23 = smov 0   ;;  %s1904_s3 = smov 0  }
   0xc   :  { %s1906_s24 = smov 0   ;;  %s1908_s25 = smov 0  }
   0xd   :  { %s1910_s26 = smov 0  }
   0xe LB: > { %2370 = sst [smem:[#allocation16_spill]] %s1810_s17  ;;  %s1242_s27 = sadd.s32 4294967295, %s1850_s26   ;;  %s1850_s26 = sphi %s1910_s26, %s22_s26   ;;  %s1846_s25 = sphi %s1908_s25, %s2403_s25   ;;  %s1842_s24 = sphi %s1906_s24, %s2395_s24   ;;  %s1838_s3 = sphi %s1904_s3, %s2402_s3   ;;  %s1834_s23 = sphi %s1902_s23, %s2394_s23   ;;  %s1830_s22 = sphi %s1900_s22, %s2401_s22   ;;  %s1826_s21 = sphi %s1898_s21, %s2400_s21   ;;  %s1822_s20 = sphi %s1896_s20, %s2399_s20   ;;  %s1818_s19 = sphi %s1894_s19, %s2398_s19   ;;  %s1814_s18 = sphi %s1892_s18, %s2397_s18   ;;  %s1810_s17 = sphi %s1890_s17, %s2396_s17  }
   0xf   : > { %2371 = sst [smem:[#allocation17_spill]] %s1842_s24  ;;  %s1243_s28 = sadd.s32 4294967294, %s1850_s26  }
  0x10   : > { %p54_p0 = scmp.ne.s32.totalorder %s1826_s21, %s1822_s20  ;;  %p1946_p1 = scmp.eq.s32.totalorder %s1242_s27, 0 }
  0x11   : > { %p142_p2 = scmp.ne.s32.totalorder %s1818_s19, %s1814_s18  ;;  %p143_p4 = scmp.eq.s32.totalorder %s1242_s27, 7 }
  0x12   : > { %s2372_s29 = scalar_select %p1946_p1, 1, 0 }
  0x13   : > { %p1955_p3 = por %p1946_p1, %p54_p0  ;;  %p148_p5 = scmp.ne.s32.totalorder %s1814_s18, %s1810_s17 }
  0x14   : > { %p149_p6 = scmp.eq.s32.totalorder %s1243_s28, 7  ;;  %p1961_p7 = por %p143_p4, %p142_p2 }
  0x15   : > { %s2373_s5 = scalar_select %p1955_p3, 1, 0 }
  0x16   : > { %s2374_s6 = scalar_select %p1961_p7, 1, 0 }
  0x17   : > { %p1244_p8 = scmp.ge.s32.totalorder %s1850_s26, 1  ;;  %p1966_p9 = por %p149_p6, %p148_p5 }
  0x18   : > { %p156_p10 = scmp.lt.s32.totalorder %s1850_s26, 9  ;;  %s1852_s9 = smov [#allocation9]  }
  0x19   : > { %s2375_s7 = scalar_select %p1966_p9, 1, 0 }
  0x1a   : > { %p1971_p11 = pnand %p1244_p8, %p156_p10  ;;  %s168_s10 = sshll.u32 %s1852_s9, 4  ;;  %s169_s10 = int_to_ptr.vmem [resolvable:$true] %s168_s10 }
  0x1b   : > { %2376 = sst [smem:[#allocation18_spill]] %s2375_s7  ;;  %s1853_s12 = smov [#allocation11]  }
  0x1c   : > { %s2377_s8 = scalar_select %p1971_p11, 1, 0 }
  0x1d   : > { %p1470_p12 = pneg %p1971_p11  ;;  %s181_s13 = sshll.u32 %s1853_s12, 4  ;;  %s1983_s13 = int_to_ptr.vmem [resolvable:$true] %s181_s13 }
  0x1e   : > { %s2379_s1 = sld [smem:[#allocation20_spill]] }
  0x1f   : > { %p1979_p13 = pnand %p1470_p12, %p1946_p1 }
  0x21   : > { %p1640_p2 = pneg %p1979_p13 }
  0x24   : > { %s1638_s16 = scalar_lea.hbm %s2379_s1, 256 }
  0x25   : > { %p1639_p0 = scmp.ne.s32.totalorder %s2379_s1, %s1638_s16  ;;  %p1645_p6 = scmp.lt.u32.totalorder %s1638_s16, %s2379_s1 }
  0x27   : > { %p1641_p4 = pnand %p1640_p2, %p1639_p0 }
  0x29   : > { %p1642_p5 = pneg %p1641_p4 }
  0x2b   : > { %p1647_p8 = pnand %p1645_p6, %p1642_p5 }
  0x2d   : > { %1650 = shalt.err (!%p1647_p8)
}
  0x2e   : > { %s1651_s12 = scalar_lea.vmem %s169_s10, 256  ;;  %p1659_p7 = scmp.lt.s32.totalorder %s169_s10, %s169_s10 }
  0x2f   : > { %p1652_p10 = scmp.ne.s32.totalorder %s169_s10, %s1651_s12  ;;  %p1660_p1 = scmp.lt.s32.totalorder %s1651_s12, %s1651_s12 }
  0x31   : > { %p1654_p12 = pnand %p1652_p10, %p1640_p2  ;;  %p1661_p3 = por %p1660_p1, %p1659_p7 }
  0x33   : > { %p1655_p9 = pneg %p1654_p12 }
  0x35   : > { %p1662_p11 = pnand %p1661_p3, %p1655_p9 }
  0x37   : > { %1665 = shalt.err (!%p1662_p11)
}
  0x38   : > { %s2364_s14 = smov 64   ;;  %s2365_s15 = smov 4  }
  0x39   : > { %1473 = dma.hbm_to_vmem [thread:$0]  (!%p1979_p13), %s2379_s1, 256, %s169_s10, [#allocation10], %s2364_s14, %s2364_s14, %s2365_s15  }
  0x3a   : > { %s2380_s2 = sld [smem:[#allocation21_spill]] }
  0x40   : > { %s1666_s9 = scalar_lea.hbm %s2380_s2, 128 }
  0x41   : > { %p1667_p1 = scmp.ne.s32.totalorder %s2380_s2, %s1666_s9  ;;  %p1673_p9 = scmp.lt.u32.totalorder %s1666_s9, %s2380_s2 }
  0x43   : > { %p1669_p3 = pnand %p1667_p1, %p1640_p2 }
  0x45   : > { %p1670_p7 = pneg %p1669_p3 }
  0x47   : > { %p1675_p11 = pnand %p1673_p9, %p1670_p7 }
  0x49   : > { %1678 = shalt.err (!%p1675_p11)
}
  0x4a   : > { %s1679_s10 = scalar_lea.vmem %s1983_s13, 128  ;;  %p1687_p6 = scmp.lt.s32.totalorder %s1983_s13, %s1983_s13 }
  0x4b   : > { %p1680_p0 = scmp.ne.s32.totalorder %s1983_s13, %s1679_s10  ;;  %p1688_p8 = scmp.lt.s32.totalorder %s1679_s10, %s1679_s10 }
  0x4d   : > { %p1682_p4 = pnand %p1680_p0, %p1640_p2  ;;  %p1689_p10 = por %p1688_p8, %p1687_p6 }
  0x4f   : > { %p1683_p5 = pneg %p1682_p4 }
  0x51   : > { %p1690_p12 = pnand %p1689_p10, %p1683_p5 }
  0x53   : > { %1693 = shalt.err (!%p1690_p12)
}
  0x54   : > { %1476 = dma.hbm_to_vmem [thread:$0]  (!%p1979_p13), %s2380_s2, 128, %s1983_s13, [#allocation10], %s2364_s14, %s2364_s14, %s2365_s15  }
  0x55   : > { %s31_s7 = sadd.s32 1, %s1842_s24  ;;  %s34_s11 = sadd.s32 1, %s1846_s25 }
  0x56   : > { %p32_p2 = scmp.ge.s32.totalorder %s31_s7, 4  ;;  %s41_s16 = sadd.s32 1, %s1830_s22 }
  0x57   : > { %p48_p1 = scmp.ne.s32.totalorder %s1830_s22, %s1826_s21  ;;  %p49_p3 = scmp.eq.s32.totalorder %s1850_s26, 0 }
  0x58   : > { %s2405_s7 = smov (%p32_p2, %s31_s7), 0  ;;  %s2407_s11 = smov (!%p32_p2, %s34_s11), %s1846_s25 }
  0x59   : > { %2381 = sst [smem:[#allocation19_spill]] %s2405_s7  ;;  %p2047_p7 = por %p49_p3, %p48_p1 }
  0x5a   : > { %s128_s27 = ssub.s32 %s1842_s24, %s2405_s7  ;;  %p36_p13 = scmp.ge.s32.totalorder %s2407_s11, 2 }
  0x5b   : > { %p1487_p9 = scmp.lt.s32.totalorder %s1850_s26, 8  ;;  %s198_s13 = sand.u32 1, %s1830_s22  }
  0x5c   : > { %s1313_s28 = sshll.u32 %s1846_s25, 11  ;;  %s2409_s11 = smov (%p36_p13, %s2407_s11), 0 }
  0x5d   : > { %s1248_s9 = sshll.u32 %s198_s13, 7  ;;  %s38_s12 = ssub.s32 %s1846_s25, %s2409_s11 }
  0x5e   : > { %p39_p11 = scmp.eq.s32.totalorder %s38_s12, 0  ;;  %s129_s10 = sor.u32 %s128_s27, %s38_s12 }
  0x5f   : > { %p130_p0 = scmp.eq.s32.totalorder %s129_s10, 0  ;;  %s2063_s14 = scalar_lea.hbm %s2352_s0, %s1313_s28 }
  0x60   : > { %s2066_s15 = scalar_select %p39_p11, %s1830_s22, %s41_s16  }
  0x61   : > { %s2383_s1 = sadd.s32 1, %s1818_s19  ;;  %s202_s7 = scalar_lea.vmem [#allocation6], %s1248_s9 }
  0x62   : > { %s2071_s2 = scalar_select %p130_p0, %s1818_s19, %s2383_s1  }
  0x63   : > { %s209_s24 = sshll.u32 %s202_s7, 4  ;;  %p2077_p4 = pnand %p1487_p9, %p2047_p7  ;;  %s2081_s24 = int_to_ptr.vmem [resolvable:$true] %s209_s24 }
  0x64   : > { %s2083_s28 = scalar_lea.sflag [#allocation7], %s198_s13  ;;  %s1694_s16 = scalar_lea.hbm %s2063_s14, 2048 }
  0x65   : > { %p1695_p5 = scmp.ne.s32.totalorder %s2063_s14, %s1694_s16  ;;  %p1696_p6 = pneg %p2077_p4 }
  0x66   : > { %s1699_s20 = scalar_lea.hbm %s2352_s0, 4096  ;;  %p1700_p12 = scmp.lt.u32.totalorder %s2063_s14, %s2352_s0 }
  0x67   : > { %p1697_p8 = pnand %p1696_p6, %p1695_p5  ;;  %p1701_p2 = scmp.lt.u32.totalorder %s1699_s20, %s1694_s16 }
  0x68   : > { %p1703_p3 = scmp.lt.u32.totalorder %s1694_s16, %s2063_s14 }
  0x69   : > { %p1698_p10 = pneg %p1697_p8  ;;  %p1702_p1 = por %p1701_p2, %p1700_p12 }
  0x6b   : > { %p1704_p7 = por %p1703_p3, %p1702_p1 }
  0x6d   : > { %p1705_p13 = pnand %p1704_p7, %p1698_p10 }
  0x6f   : > { %1708 = shalt.err (!%p1705_p13)
}
  0x70   : > { %s1709_s13 = scalar_lea.vmem %s2081_s24, 2048  ;;  %s1856_s10 = smov [#allocation6]  }
  0x71   : > { %p1710_p9 = scmp.ne.s32.totalorder %s2081_s24, %s1709_s13  ;;  %s1714_s17 = sshll.u32 %s1856_s10, 4  ;;  %s1715_s17 = int_to_ptr.vmem [resolvable:$false] %s1714_s17 }
  0x72   : > { %s1716_s30 = scalar_lea.vmem %s1715_s17, 4096  ;;  %p1717_p5 = scmp.lt.s32.totalorder %s2081_s24, %s1715_s17 }
  0x73   : > { %p1712_p11 = pnand %p1710_p9, %p1696_p6  ;;  %p1718_p8 = scmp.lt.s32.totalorder %s1716_s30, %s1709_s13 }
  0x75   : > { %p1713_p0 = pneg %p1712_p11  ;;  %p1719_p12 = por %p1718_p8, %p1717_p5 }
  0x77   : > { %p1720_p2 = pnand %p1719_p12, %p1713_p0 }
  0x79   : > { %1723 = shalt.err (!%p1720_p2)
}
  0x7a   : > { %s2385_s16 = smov 4   ;;  %s2386_s1 = smov 64  }
  0x7b   : > { %1480 = dma.hbm_to_vmem [thread:$0]  (!%p2077_p4), %s2063_s14, 2048, %s2081_s24, %s2083_s28, %s2386_s1, %s2386_s1, %s2385_s16  }
  0x7c   : > { %p2387_p6 = scmp.ne.s32.totalorder %s2377_s8, 0 }
  0x7d   : > { %s223_s7 = sand.u32 (!%p2387_p6), 1, %s1826_s21   ;;  %p2388_p10 = scmp.ne.s32.totalorder (!%p2387_p6), %s2373_s5, 0 }
  0x7e   : > { %221 = sbr.rel (%p2387_p6) target bundleno = 1546 (0x60a), region = 36  ;;  %s1252_s20 = sshll.u32 (!%p2387_p6), %s223_s7, 7 }
  0x7f   : > { %s224_s9 = scalar_lea.sflag (!%p2387_p6), [#allocation7], %s223_s7  ;;  %s2117_s12 = scalar_lea.vmem (!%p2387_p6), [#allocation6], %s1252_s20 }
  0x85   : > { %1797 = dma.done.wait (%p2388_p10), %s224_s9, 2048  }
  0x86   : > { %1799 = vsyncadd (%p2388_p10), %s224_s9, 4294965248  ;;  %p2389_p1 = scmp.ne.s32.totalorder %s2372_s29, 0 }
  0x88   : > { %1801 = dma.done.wait (%p2389_p1), [#allocation10], 384  }
  0x89   : > { %1803 = vsyncadd (%p2389_p1), [#allocation10], 4294966912  ;;  %s257_s24 = sand.u32 1, %s1814_s18   ;;  %p1256_p4 = scmp.ne.s32.totalorder %s1834_s23, 0 }
  0x8a   : > { %s1255_s8 = sshll.u32 %s257_s24, 6  ;;  %v1587_v0 = vld [vmem:[#allocation9] sm:$0xff] (!%p1256_p4)   ;;  %v1588_v1 = vld [vmem:[#allocation9 + $0x8] sm:$0xff] (!%p1256_p4)   ;;  %vm394_vm0 = vcmask (!%p1256_p4), 261120   ;;  %v1593_v6 = vld [vmem:[%s2117_s12 + $0x10] sm:$0xff] (!%p1256_p4)   ;;  %vm620_vm1 = vcmask (!%p1256_p4), 31744  }
  0x8b   : > { %s2130_s14 = scalar_lea.vmem [#allocation12], %s1255_s8  ;;  %265 = sbr.rel (%p1256_p4) target bundleno = 516 (0x204), region = 52  ;;  %1372 = vmatprep.subr.bf16.mxu0 (!%p1256_p4), %v1587_v0  ;;  %1450 = vmatprep.subr.bf16.mxu1 (!%p1256_p4), %v1587_v0  ;;  %v1589_v2 = vld [vmem:[%s2117_s12] sm:$0xff] (!%p1256_p4)   ;;  %v1591_v4 = vld [vmem:[%s2117_s12 + $0x8] sm:$0xff] (!%p1256_p4)   ;;  %v1594_v7 = vld [vmem:[%s2117_s12 + $0x50] sm:$0xff] (!%p1256_p4)   ;;  %vm697_vm2 = vcmask (!%p1256_p4), 130048  }
  0x8c   : > { %1373 = vmatpush3.bf16.msra.mxu0 (!%p1256_p4), %v1587_v0  ;;  %1452 = vmatpush3.bf16.msra.mxu1 (!%p1256_p4), %v1587_v0  ;;  %v1590_v3 = vld [vmem:[%s2117_s12 + $0x40] sm:$0xff] (!%p1256_p4)   ;;  %v1592_v5 = vld [vmem:[%s2117_s12 + $0x48] sm:$0xff] (!%p1256_p4)   ;;  %v1595_v8 = vld [vmem:[%s2117_s12 + $0x18] sm:$0xff] (!%p1256_p4)   ;;  %s1857_s29 = smov (!%p1256_p4), 120   ;;  %s1858_s5 = smov (!%p1256_p4), 124  }
  0x8d   : > { %1374 = vmatprep.subr.bf16.mxu0 (!%p1256_p4), %v1588_v1  ;;  %1451 = vmatprep.subr.bf16.mxu1 (!%p1256_p4), %v1588_v1  ;;  %v1596_v9 = vld [vmem:[%s2117_s12 + $0x58] sm:$0xff] (!%p1256_p4)   ;;  %v1597_v10 = vld [vmem:[%s2117_s12 + $0x20] sm:$0xff] (!%p1256_p4)   ;;  %v1599_v12 = vld [vmem:[%s2117_s12 + $0x28] sm:$0xff] (!%p1256_p4)  }
  0x8e   : > { %1376 = vmatprep.mubr.msk.bf16.mxu0 (!%p1256_p4), %vm394_vm0, %v1589_v2  ;;  %1392 = vmatprep.mubr.msk.bf16.mxu1 (!%p1256_p4), %vm394_vm0, %v1590_v3  ;;  %v1598_v11 = vld [vmem:[%s2117_s12 + $0x60] sm:$0xff] (!%p1256_p4)   ;;  %v1600_v13 = vld [vmem:[%s2117_s12 + $0x68] sm:$0xff] (!%p1256_p4)   ;;  %v1601_v14 = vld [vmem:[%s2117_s12 + $0x30] sm:$0xff] (!%p1256_p4)  }
  0x8f   : > { %v1602_v15 = vld [vmem:[%s2117_s12 + $0x70] sm:$0xff] (!%p1256_p4)   ;;  %v1603_v16 = vld [vmem:[%s2117_s12 + $0x38] sm:$0xff] (!%p1256_p4)  }
  0x90   : > { %1375 = vmatpush3.bf16.msra.mxu0 (!%p1256_p4), %v1588_v1  ;;  %1453 = vmatpush3.bf16.msra.mxu1 (!%p1256_p4), %v1588_v1  ;;  %v1604_v17 = vld [vmem:[%s2117_s12 + $0x78] sm:$0xff] (!%p1256_p4)  }
  0x93   : > { %1377 = vmatmul.mubr.msk.bf16.vlgmr.msra.gmra.mrb[0].mxu0 %vm394_vm0, %v1591_v4  ;;  %1393 = vmatmul.mubr.msk.bf16.vlgmr.msra.gmra.mrb[0].mxu1 %vm394_vm0, %v1592_v5 }
  0x94   : > { %1380 = vmatprep.mubr.msk.bf16.mxu0 %vm394_vm0, %v1593_v6  ;;  %1396 = vmatprep.mubr.msk.bf16.mxu1 %vm394_vm0, %v1594_v7 }
  0x9b   : > { %1381 = vmatmul.mubr.msk.bf16.gmra.mrb[4].mxu0 %vm394_vm0, %v1595_v8  ;;  %1397 = vmatmul.mubr.msk.bf16.gmra.mrb[4].mxu1 %vm394_vm0, %v1596_v9 }
  0x9c   : > { %1384 = vmatprep.mubr.msk.bf16.mxu0 %vm394_vm0, %v1597_v10  ;;  %1400 = vmatprep.mubr.msk.bf16.mxu1 %vm394_vm0, %v1598_v11 }
  0xa3   : > { %1385 = vmatmul.mubr.msk.bf16.gmra.mrb[8].mxu0 %vm394_vm0, %v1599_v12  ;;  %1401 = vmatmul.mubr.msk.bf16.gmra.mrb[8].mxu1 %vm394_vm0, %v1600_v13 }
  0xa4   : > { %1388 = vmatprep.mubr.msk.bf16.mxu0 %vm394_vm0, %v1601_v14  ;;  %1404 = vmatprep.mubr.msk.bf16.mxu1 %vm394_vm0, %v1602_v15 }
  0xab   : > { %1389 = vmatmul.mubr.msk.bf16.gmra.mrb[12].mxu0 %vm394_vm0, %v1603_v16  ;;  %1405 = vmatmul.mubr.msk.bf16.gmra.mrb[12].mxu1 %vm394_vm0, %v1604_v17 }
 0x166   : > { %v1378_v18 = vpop.f32.mrb[0].mxu0  ;;  %v1394_v19 = vpop.f32.mrb[0].mxu1 }
 0x167   : > { %v477_v20 = vpop.f32.mrb[1].mxu0  ;;  %v541_v21 = vpop.f32.mrb[1].mxu1 }
 0x168   : > { %v1379_v22 = vpop.f32.mrb[2].mxu0  ;;  %v1395_v23 = vpop.f32.mrb[2].mxu1 }
 0x169   : > { %v605_v24 = vpack.c.bf16 %v1379_v22, %v1378_v18  ;;  %v613_v25 = vpack.c.bf16 %v1395_v23, %v1394_v19  ;;  %v480_v26 = vpop.f32.mrb[3].mxu0  ;;  %v544_v27 = vpop.f32.mrb[3].mxu1 }
 0x16a   : > { %v604_v28 = vpack.c.bf16 %v480_v26, %v477_v20  ;;  %v612_v29 = vpack.c.bf16 %v544_v27, %v541_v21 }
 0x16b   : > { %622 = vst.msk [vmem:[#allocation2 + $0x8] sm:$0xff] %vm620_vm1, %v605_v24  ;;  %630 = vst.msk [vmem:[#allocation2 + $0x48] sm:$0xff] %vm620_vm1, %v613_v25 }
 0x16c   : > { %621 = vst.msk [vmem:[#allocation2] sm:$0xff] %vm620_vm1, %v604_v28  ;;  %629 = vst.msk [vmem:[#allocation2 + $0x40] sm:$0xff] %vm620_vm1, %v612_v29 }
 0x16e   : > { %v1382_v30 = vpop.f32.mrb[4].mxu0  ;;  %v1398_v31 = vpop.f32.mrb[4].mxu1 }
 0x16f   : > { %v2169_v32 = vpop.f32.mrb[5].mxu0  ;;  %v2171_v33 = vpop.f32.mrb[5].mxu1 }
 0x170   : > { %v2173_v34 = vpop.f32.mrb[6].mxu0  ;;  %v2175_v35 = vpop.f32.mrb[6].mxu1 }
 0x171   : > { %v607_v36 = vpack.c.bf16 %v2173_v34, %v1382_v30  ;;  %v615_v37 = vpack.c.bf16 %v2175_v35, %v1398_v31  ;;  %v2179_v38 = vpop.f32.mrb[7].mxu0  ;;  %v2181_v39 = vpop.f32.mrb[7].mxu1 }
 0x172   : > { %v606_v40 = vpack.c.bf16 %v2179_v38, %v2169_v32  ;;  %v614_v41 = vpack.c.bf16 %v2181_v39, %v2171_v33 }
 0x173   : > { %624 = vst.msk [vmem:[#allocation2 + $0x18] sm:$0xff] %vm620_vm1, %v607_v36  ;;  %632 = vst.msk [vmem:[#allocation2 + $0x58] sm:$0xff] %vm620_vm1, %v615_v37 }
 0x174   : > { %623 = vst.msk [vmem:[#allocation2 + $0x10] sm:$0xff] %vm620_vm1, %v606_v40  ;;  %631 = vst.msk [vmem:[#allocation2 + $0x50] sm:$0xff] %vm620_vm1, %v614_v41 }
 0x176   : > { %v1386_v42 = vpop.f32.mrb[8].mxu0  ;;  %v1402_v43 = vpop.f32.mrb[8].mxu1 }
 0x177   : > { %v639_v44 = vmax.f32 %v1378_v18, %v1386_v42  ;;  %v647_v45 = vmax.f32 %v1394_v19, %v1402_v43  ;;  %v509_v46 = vpop.f32.mrb[9].mxu0  ;;  %v573_v47 = vpop.f32.mrb[9].mxu1 }
 0x178   : > { %v637_v48 = vmax.f32 %v477_v20, %v509_v46  ;;  %v645_v49 = vmax.f32 %v541_v21, %v573_v47  ;;  %v1387_v50 = vpop.f32.mrb[10].mxu0  ;;  %v1403_v51 = vpop.f32.mrb[10].mxu1 }
 0x179   : > { %v609_v52 = vpack.c.bf16 %v1387_v50, %v1386_v42  ;;  %v640_v53 = vmax.f32 %v1379_v22, %v1387_v50  ;;  %v617_v54 = vpack.c.bf16 %v1403_v51, %v1402_v43  ;;  %v648_v55 = vmax.f32 %v1395_v23, %v1403_v51  ;;  %v512_v56 = vpop.f32.mrb[11].mxu0  ;;  %v576_v57 = vpop.f32.mrb[11].mxu1 }
 0x17a   : > { %v653_v58 = vmax.f32 %v637_v48, %v645_v49  ;;  %v608_v59 = vpack.c.bf16 %v512_v56, %v509_v46  ;;  %v638_v60 = vmax.f32 %v480_v26, %v512_v56  ;;  %v616_v61 = vpack.c.bf16 %v576_v57, %v573_v47 }
 0x17b   : > { %626 = vst.msk [vmem:[#allocation2 + $0x28] sm:$0xff] %vm620_vm1, %v609_v52  ;;  %634 = vst.msk [vmem:[#allocation2 + $0x68] sm:$0xff] %vm620_vm1, %v617_v54  ;;  %v646_v62 = vmax.f32 %v544_v27, %v576_v57  ;;  %v655_v63 = vmax.f32 %v639_v44, %v647_v45  ;;  %v656_v0 = vmax.f32 %v640_v53, %v648_v55 }
 0x17c   : > { %625 = vst.msk [vmem:[#allocation2 + $0x20] sm:$0xff] %vm620_vm1, %v608_v59  ;;  %633 = vst.msk [vmem:[#allocation2 + $0x60] sm:$0xff] %vm620_vm1, %v616_v61 }
 0x17d   : > { %v654_v1 = vmax.f32 %v638_v60, %v646_v62  ;;  %v662_v2 = vpack.c.bf16 %v656_v0, %v655_v63 }
 0x17e   : > { %v1390_v3 = vpop.f32.mrb[12].mxu0  ;;  %v1406_v4 = vpop.f32.mrb[12].mxu1 }
 0x17f   : > { %v643_v5 = vmax.f32 %v1382_v30, %v1390_v3  ;;  %v651_v6 = vmax.f32 %v1398_v31, %v1406_v4  ;;  %v589_v7 = vpop.f32.mrb[13].mxu1  ;;  %687 = vrot.lane.b32.xlu1 %v662_v2, %s1857_s29  ;;  %671 = vrot.lane.b32.xlu0 %v662_v2, %s1858_s5  ;;  %v525_v8 = vpop.f32.mrb[13].mxu0  ;;  %v661_v9 = vpack.c.bf16 %v654_v1, %v653_v58 }
 0x180   : > { %v649_v10 = vmax.f32 %v2171_v33, %v589_v7  ;;  %v641_v11 = vmax.f32 %v2169_v32, %v525_v8  ;;  %v1391_v12 = vpop.f32.mrb[14].mxu0  ;;  %v1407_v13 = vpop.f32.mrb[14].mxu1 }
 0x181   : > { %v659_v14 = vmax.f32 %v643_v5, %v651_v6  ;;  %v611_v15 = vpack.c.bf16 %v1391_v12, %v1390_v3  ;;  %v644_v16 = vmax.f32 %v2173_v34, %v1391_v12  ;;  %v619_v17 = vpack.c.bf16 %v1407_v13, %v1406_v4  ;;  %v528_v18 = vpop.f32.mrb[15].mxu0  ;;  %v592_v19 = vpop.f32.mrb[15].mxu1 }
 0x182   : > { %v657_v20 = vmax.f32 %v641_v11, %v649_v10  ;;  %v652_v21 = vmax.f32 %v2175_v35, %v1407_v13  ;;  %v610_v22 = vpack.c.bf16 %v528_v18, %v525_v8  ;;  %v642_v23 = vmax.f32 %v2179_v38, %v528_v18 }
 0x183   : > { %628 = vst.msk [vmem:[#allocation2 + $0x38] sm:$0xff] %vm620_vm1, %v611_v15  ;;  %636 = vst.msk [vmem:[#allocation2 + $0x78] sm:$0xff] %vm620_vm1, %v619_v17  ;;  %v618_v24 = vpack.c.bf16 %v592_v19, %v589_v7  ;;  %v650_v25 = vmax.f32 %v2181_v39, %v592_v19  ;;  %669 = vrot.lane.b32.xlu0 %v661_v9, %s1858_s5 }
 0x184   : > { %v660_v26 = vmax.f32 %v644_v16, %v652_v21  ;;  %627 = vst.msk [vmem:[#allocation2 + $0x30] sm:$0xff] %vm620_vm1, %v610_v22 }
 0x185   : > { %635 = vst.msk [vmem:[#allocation2 + $0x70] sm:$0xff] %vm620_vm1, %v618_v24  ;;  %v658_v27 = vmax.f32 %v642_v23, %v650_v25 }
 0x186   : > { %v664_v28 = vpack.c.bf16 %v660_v26, %v659_v14 }
 0x187   : > { %685 = vrot.lane.b32.xlu0 %v661_v9, %s1857_s29  ;;  %v663_v29 = vpack.c.bf16 %v658_v27, %v657_v20 }
 0x188   : > { %675 = vrot.lane.b32.xlu1 %v664_v28, %s1858_s5 }
 0x18b   : > { %689 = vrot.lane.b32.xlu0 %v663_v29, %s1857_s29 }
 0x18c   : > { %673 = vrot.lane.b32.xlu1 %v663_v29, %s1858_s5 }
 0x190   : > { %691 = vrot.lane.b32.xlu1 %v664_v28, %s1857_s29 }
 0x1f1   : > { %v688_v30 = vpop.permute.xlu1 %687  ;;  %v672_v31 = vpop.permute.xlu0 %671 }
 0x1f2   : > { %699 = vst.msk [vmem:[#allocation4 + $0x8] sm:$0xff] %vm697_vm2, %v688_v30 }
 0x1f3   : > { %682 = vst.msk [vmem:[#allocation3 + $0x8] sm:$0xff] %vm620_vm1, %v672_v31 }
 0x1f5   : > { %v670_v32 = vpop.permute.xlu0 %669 }
 0x1f6   : > { %681 = vst.msk [vmem:[#allocation3] sm:$0xff] %vm620_vm1, %v670_v32 }
 0x1f9   : > { %v686_v33 = vpop.permute.xlu0 %685 }
 0x1fa   : > { %698 = vst.msk [vmem:[#allocation4] sm:$0xff] %vm697_vm2, %v686_v33  ;;  %v676_v34 = vpop.permute.xlu1 %675 }
 0x1fb   : > { %684 = vst.msk [vmem:[#allocation3 + $0x18] sm:$0xff] %vm620_vm1, %v676_v34 }
 0x1fd   : > { %v690_v35 = vpop.permute.xlu0 %689 }
 0x1fe   : > { %700 = vst.msk [vmem:[#allocation4 + $0x10] sm:$0xff] %vm697_vm2, %v690_v35  ;;  %v674_v36 = vpop.permute.xlu1 %673 }
 0x1ff   : > { %683 = vst.msk [vmem:[#allocation3 + $0x10] sm:$0xff] %vm620_vm1, %v674_v36 }
 0x202   : > { %v692_v37 = vpop.permute.xlu1 %691 }
 0x203   : > { %701 = vst.msk [vmem:[#allocation4 + $0x18] sm:$0xff] %vm697_vm2, %v692_v37 }
 0x204 PF: > { %v723_v38 = vld [vmem:[#allocation3] sm:$0xff]  ;;  %vm727_vm3 = vcmask 31744   ;;  %v724_v39 = vld [vmem:[#allocation3 + $0x8] sm:$0xff]  ;;  %s1291_s27 = sshll.u32 %s1834_s23, 6  ;;  %v726_v45 = vld [vmem:[#allocation3 + $0x18] sm:$0xff]  ;;  %vm817_vm4 = vcmask 523264  }
 0x205   : > { %1454 = vmatprep.subr.msk.bf16.mxu0 %vm727_vm3, %v723_v38  ;;  %v741_v40 = vsel %vm727_vm3, %v723_v38, 0  ;;  %s715_s28 = sshra.s32 %s1291_s27, 4  ;;  %v744_v42 = vsel %vm727_vm3, %v724_v39, 0  ;;  %v750_v46 = vsel %vm727_vm3, %v726_v45, 0  ;;  %vm1003_vm5 = vcmask 130048   ;;  %s703_s17 = sshra.s32 %s1291_s27, 3 }
 0x206   : > { %1409 = vmatpush3.bf16.xpose.msra.mxu0 %v741_v40  ;;  %s1293_s13 = sshll.u32 %s715_s28, 3  ;;  %v725_v43 = vld [vmem:[#allocation3 + $0x10] sm:$0xff]  ;;  %s1292_s30 = sshll.u32 %s703_s17, 2  ;;  %vm1107_vm6 = vcmask 261120  }
 0x207   : > { %1455 = vmatprep.subr.msk.bf16.mxu0 %vm727_vm3, %v724_v39  ;;  %s718_s10 = scalar_lea.vmem [#allocation2], %s1293_s13  ;;  %v747_v44 = vsel %vm727_vm3, %v725_v43, 0  ;;  %s1081_s16 = sld [smem:[#allocation5]] }
 0x208   : > { %v719_v41 = vld [vmem:[%s718_s10] sm:$0xff]  ;;  %v720_v47 = vld [vmem:[%s718_s10 + $0x8] sm:$0xff]  ;;  %v721_v48 = vld [vmem:[%s718_s10 + $0x10] sm:$0xff]  ;;  %s706_s1 = scalar_lea.vmem %s2117_s12, %s1292_s30 [#allocation6]  ;;  %s1308_s7 = sshll.u32 %s1834_s23, 3 }
 0x209   : > { %1416 = vmatprep.mubr.msk.bf16.mxu0 %vm727_vm3, %v719_v41  ;;  %v722_v49 = vld [vmem:[%s718_s10 + $0x18] sm:$0xff]  ;;  %s1309_s20 = sshll.u32 %s1838_s3, 5  ;;  %s1132_s3 = sshll.u32 %s2130_s14, 4  ;;  %s2281_s3 = int_to_ptr.vmem [resolvable:$true] %s1132_s3 }
 0x20a   : > { %s1129_s9 = sadd.s32 %s1309_s20, %s1308_s7  ;;  %s2291_s5 = scalar_lea.sflag [#allocation8], %s257_s24 }
 0x20b   : > { %s1310_s23 = sshll.u32 %s1129_s9, 7  ;;  %s1724_s27 = scalar_lea.vmem %s2281_s3, 1024 }
 0x20c   : > { %s2279_s29 = scalar_lea.hbm %s2356_s4, %s1310_s23  ;;  %p1725_p3 = scmp.ne.s32.totalorder %s2281_s3, %s1724_s27 }
 0x20d   : > { %p2390_p7 = scmp.ne.s32.totalorder %s2374_s6, 0  ;;  %s1859_s28 = smov [#allocation12]  }
 0x20e   : > { %1411 = vmatpush3.bf16.xpose.msra.mxu0 %v744_v42  ;;  %v910_v42 = vld [vmem:[#allocation4] sm:$0xff]  ;;  %s1728_s13 = sshll.u32 %s1859_s28, 4  ;;  %s1729_s13 = int_to_ptr.vmem [resolvable:$false] %s1728_s13 }
 0x20f   : > { %1456 = vmatprep.subr.msk.bf16.mxu0 %vm727_vm3, %v725_v43  ;;  %1424 = vmatprep.subr.bf16.mxu1 %v910_v42  ;;  %v911_v43 = vld [vmem:[#allocation4 + $0x8] sm:$0xff]  ;;  %p1726_p13 = pnand %p1725_p3, %p2390_p7  ;;  %s1730_s10 = scalar_lea.vmem %s1729_s13, 2048 }
 0x210   : > { %1425 = vmatpush3.bf16.msra.mxu1 %v910_v42  ;;  %v1331_v42 = vld [vmem:[%s706_s1 + $0x10] sm:$0xff]   ;;  %p1731_p11 = scmp.lt.s32.totalorder %s2281_s3, %s1729_s13  ;;  %p1732_p0 = scmp.lt.s32.totalorder %s1730_s10, %s1724_s27 }
 0x211   : > { %1426 = vmatprep.subr.bf16.mxu1 %v911_v43  ;;  %p1727_p9 = pneg %p1726_p13 }
 0x212   : > { %p1733_p5 = por %p1732_p0, %p1731_p11 }
 0x214   : > { %1427 = vmatpush3.bf16.msra.mxu1 %v911_v43  ;;  %p1734_p8 = pnand %p1733_p5, %p1727_p9 }
 0x216   : > { %1413 = vmatpush3.bf16.xpose.msra.mxu0 %v747_v44  ;;  %v912_v44 = vld [vmem:[#allocation4 + $0x10] sm:$0xff] }
 0x217   : > { %1457 = vmatprep.subr.msk.bf16.mxu0 %vm727_vm3, %v726_v45  ;;  %1428 = vmatprep.subr.bf16.mxu1 %v912_v44  ;;  %v913_v45 = vld [vmem:[#allocation4 + $0x18] sm:$0xff] }
 0x218   : > { %1429 = vmatpush3.bf16.msra.mxu1 %v912_v44 }
 0x219   : > { %1430 = vmatprep.subr.bf16.mxu1 %v913_v45 }
 0x21c   : > { %1431 = vmatpush3.bf16.msra.mxu1 %v913_v45 }
 0x21e   : > { %1415 = vmatpush3.bf16.xpose.msra.mxu0 %v750_v46  ;;  %v1605_v46 = vld [vmem:[#allocation11] sm:$0xff]  }
 0x21f   : > { %1440 = vmatprep.subr.bf16.mxu1 %v1605_v46 }
 0x225   : > { %1417 = vmatmul.mubr.msk.bf16.vlgmr.msra.gmra.mrb[0].mxu0 %vm727_vm3, %v720_v47 }
 0x226   : > { %1420 = vmatprep.mubr.msk.bf16.mxu0 %vm727_vm3, %v721_v48 }
 0x22d   : > { %1421 = vmatmul.mubr.msk.bf16.gmra.mrb[4].mxu0 %vm727_vm3, %v722_v49 }
 0x2f8   : > { %v1418_v50 = vpop.f32.mrb[0].mxu0 }
 0x2f9   : > { %v786_v51 = vpop.f32.mrb[1].mxu0  ;;  %v824_v52 = vsel %vm817_vm4, %v1418_v50, -inf }
 0x2fa   : > { %825 = vmax.xlane.f32.xlu1 %v824_v52  ;;  %v1419_v53 = vpop.f32.mrb[2].mxu0  ;;  %v818_v54 = vsel %vm817_vm4, %v786_v51, -inf }
 0x2fb   : > { %819 = vmax.xlane.f32.xlu0 %v818_v54  ;;  %v789_v55 = vpop.f32.mrb[3].mxu0  ;;  %v827_v56 = vsel %vm817_vm4, %v1419_v53, -inf }
 0x2fc   : > { %v821_v57 = vsel %vm817_vm4, %v789_v55, -inf }
 0x2fe   : > { %828 = vmax.xlane.f32.xlu1 %v827_v56 }
 0x2ff   : > { %822 = vmax.xlane.f32.xlu0 %v821_v57 }
 0x300   : > { %v1422_v58 = vpop.f32.mrb[4].mxu0 }
 0x301   : > { %v802_v59 = vpop.f32.mrb[5].mxu0  ;;  %v836_v0 = vsel %vm817_vm4, %v1422_v58, -inf }
 0x302   : > { %v1423_v60 = vpop.f32.mrb[6].mxu0  ;;  %v830_v61 = vsel %vm817_vm4, %v802_v59, -inf }
 0x303   : > { %831 = vmax.xlane.f32.xlu0 %v830_v61  ;;  %v805_v62 = vpop.f32.mrb[7].mxu0  ;;  %v839_v1 = vsel %vm817_vm4, %v1423_v60, -inf }
 0x304   : > { %v833_v63 = vsel %vm817_vm4, %v805_v62, -inf }
 0x305   : > { %834 = vmax.xlane.f32.xlu1 %v833_v63 }
 0x307   : > { %837 = vmax.xlane.f32.xlu0 %v836_v0 }
 0x309   : > { %840 = vmax.xlane.f32.xlu1 %v839_v1 }
 0x387   : > { %v826_v2 = vpop.xlane.xlu1 %825 }
 0x388   : > { %v844_v3 = vsub.f32 %v1418_v50, %v826_v2  ;;  %v820_v4 = vpop.xlane.xlu0 %819 }
 0x389   : > { %v842_v5 = vsub.f32 %v786_v51, %v820_v4 }
 0x38a   : > { %v854_v6 = vmul.f32 1.442695, %v844_v3 }
 0x38b   : > { %v850_v7 = vmul.f32 1.442695, %v842_v5  ;;  %v829_v8 = vpop.xlane.xlu1 %828 }
 0x38c   : > { %v845_v9 = vsub.f32 %v1419_v53, %v829_v8  ;;  %v823_v10 = vpop.xlane.xlu0 %822 }
 0x38d   : > { %1606 = vpow2.f32 %v850_v7  ;;  %v843_v11 = vsub.f32 %v789_v55, %v823_v10 }
 0x38e   : > { %1608 = vpow2.f32 %v854_v6  ;;  %v856_v12 = vmul.f32 1.442695, %v845_v9 }
 0x38f   : > { %v852_v13 = vmul.f32 1.442695, %v843_v11 }
 0x390   : > { %v832_v14 = vpop.xlane.xlu0 %831 }
 0x391   : > { %1610 = vpow2.f32 %v852_v13  ;;  %v846_v15 = vsub.f32 %v802_v59, %v832_v14 }
 0x392   : > { %v835_v16 = vpop.xlane.xlu1 %834  ;;  %1612 = vpow2.f32 %v856_v12 }
 0x393   : > { %v858_v17 = vmul.f32 1.442695, %v846_v15  ;;  %v847_v18 = vsub.f32 %v805_v62, %v835_v16 }
 0x394   : > { %v838_v19 = vpop.xlane.xlu0 %837 }
 0x395   : > { %1614 = vpow2.f32 %v858_v17  ;;  %v860_v20 = vmul.f32 1.442695, %v847_v18  ;;  %v848_v21 = vsub.f32 %v1422_v58, %v838_v19 }
 0x396   : > { %v841_v22 = vpop.xlane.xlu1 %840 }
 0x397   : > { %v1607_v23 = vpop.eup %1606  ;;  %1616 = vpow2.f32 %v860_v20  ;;  %v862_v24 = vmul.f32 1.442695, %v848_v21  ;;  %v849_v25 = vsub.f32 %v1423_v60, %v841_v22 }
 0x398   : > { %v866_v26 = vsel %vm817_vm4, %v1607_v23, 0.0  ;;  %v2245_v27 = vpop.eup %1608 }
 0x399   : > { %1618 = vpow2.f32 %v862_v24  ;;  %v864_v28 = vmul.f32 1.442695, %v849_v25  ;;  %867 = vadd.xlane.f32.xlu0 %v866_v26  ;;  %v872_v30 = vsel %vm817_vm4, %v2245_v27, 0.0  ;;  %v1315_v24 = vld [vmem:[%s706_s1] sm:$0xff]   ;;  %v1082_v25 = vstv %s1081_s16 }
 0x39b   : > { %v1611_v29 = vpop.eup %1610  ;;  %1620 = vpow2.f32 %v864_v28  ;;  %v1316_v28 = vunpack.c.l.bf16 %v1315_v24 }
 0x39c   : > { %v869_v31 = vsel %vm817_vm4, %v1611_v29, 0.0  ;;  %v1613_v32 = vpop.eup %1612 }
 0x39d   : > { %873 = vadd.xlane.f32.xlu0 %v872_v30  ;;  %870 = vadd.xlane.f32.xlu1 %v869_v31  ;;  %v875_v35 = vsel %vm817_vm4, %v1613_v32, 0.0 }
 0x39f   : > { %v1615_v33 = vpop.eup %1614 }
 0x3a0   : > { %v878_v34 = vsel %vm817_vm4, %v1615_v33, 0.0 }
 0x3a1   : > { %v1617_v36 = vpop.eup %1616  ;;  %879 = vadd.xlane.f32.xlu0 %v878_v34  ;;  %876 = vadd.xlane.f32.xlu1 %v875_v35  ;;  %v1317_v34 = vunpack.c.h.bf16 %v1315_v24 }
 0x3a2   : > { %v881_v39 = vsel %vm817_vm4, %v1617_v36, 0.0 }
 0x3a3   : > { %v1619_v37 = vpop.eup %1618 }
 0x3a4   : > { %v884_v38 = vsel %vm817_vm4, %v1619_v37, 0.0 }
 0x3a5   : > { %v1621_v40 = vpop.eup %1620  ;;  %885 = vadd.xlane.f32.xlu0 %v884_v38  ;;  %882 = vadd.xlane.f32.xlu1 %v881_v39 }
 0x3a6   : > { %v887_v41 = vsel %vm817_vm4, %v1621_v40, 0.0 }
 0x3a9   : > { %888 = vadd.xlane.f32.xlu1 %v887_v41 }
 0x426   : > { %v868_v47 = vpop.xlane.xlu0 %867 }
 0x427   : > { %1622 = vrcp.f32 %v868_v47 }
 0x42a   : > { %v874_v48 = vpop.xlane.xlu0 %873  ;;  %v871_v49 = vpop.xlane.xlu1 %870 }
 0x42b   : > { %1624 = vrcp.f32 %v871_v49 }
 0x42c   : > { %1626 = vrcp.f32 %v874_v48 }
 0x42e   : > { %v880_v50 = vpop.xlane.xlu0 %879  ;;  %v877_v51 = vpop.xlane.xlu1 %876 }
 0x42f   : > { %1628 = vrcp.f32 %v877_v51 }
 0x430   : > { %1630 = vrcp.f32 %v880_v50 }
 0x431   : > { %v1623_v54 = vpop.eup %1622 }
 0x432   : > { %v886_v52 = vpop.xlane.xlu0 %885  ;;  %v883_v53 = vpop.xlane.xlu1 %882  ;;  %v898_v57 = vmul.f32 %v1623_v54, %v1607_v23  ;;  %v1330_v23 = vld [vmem:[%s706_s1 + $0x8] sm:$0xff]  }
 0x433   : > { %1632 = vrcp.f32 %v883_v53  ;;  %v1320_v26 = vunpack.c.l.bf16 %v1330_v23  ;;  %v1321_v31 = vunpack.c.h.bf16 %v1330_v23 }
 0x434   : > { %1634 = vrcp.f32 %v886_v52  ;;  %v1325_v52 = vunpack.c.h.bf16 %v1331_v42 }
 0x435   : > { %v1625_v55 = vpop.eup %1624 }
 0x436   : > { %v889_v56 = vpop.xlane.xlu1 %888  ;;  %v899_v58 = vmul.f32 %v1625_v55, %v1611_v29  ;;  %v1627_v59 = vpop.eup %1626 }
 0x437   : > { %1636 = vrcp.f32 %v889_v56  ;;  %v900_v62 = vmul.f32 %v1627_v59, %v2245_v27 }
 0x438   : > { %v906_v60 = vpack.c.bf16 %v899_v58, %v898_v57 }
 0x439   : > { %v1629_v61 = vpop.eup %1628 }
 0x43a   : > { %1432 = vmatprep.mubr.msk.bf16.mxu1 %vm817_vm4, %v906_v60  ;;  %v901_v63 = vmul.f32 %v1629_v61, %v1613_v32  ;;  %v1631_v0 = vpop.eup %1630 }
 0x43b   : > { %v902_v4 = vmul.f32 %v1631_v0, %v1615_v33 }
 0x43c   : > { %v907_v1 = vpack.c.bf16 %v901_v63, %v900_v62 }
 0x43d   : > { %v1633_v2 = vpop.eup %1632 }
 0x43e   : > { %v1635_v3 = vpop.eup %1634  ;;  %1433 = vmatmul.mubr.msk.bf16.vlgmr.msra.gmra.mrb[0].mxu1 %vm817_vm4, %v907_v1  ;;  %v903_v5 = vmul.f32 %v1633_v2, %v1617_v36 }
 0x43f   : > { %1441 = vmatpush3.bf16.msra.mxu1 %v1605_v46  ;;  %v904_v8 = vmul.f32 %v1635_v3, %v1619_v37  ;;  %v1324_v46 = vunpack.c.l.bf16 %v1331_v42 }
 0x440   : > { %v908_v7 = vpack.c.bf16 %v903_v5, %v902_v4 }
 0x441   : > { %v1637_v6 = vpop.eup %1636 }
 0x442   : > { %v905_v9 = vmul.f32 %v1637_v6, %v1621_v40  ;;  %1436 = vmatprep.mubr.msk.bf16.mxu1 %vm817_vm4, %v908_v7  ;;  %v1332_v40 = vld [vmem:[%s706_s1 + $0x18] sm:$0xff]  }
 0x443   : > { %v1328_v44 = vunpack.c.l.bf16 %v1332_v40  ;;  %v1329_v49 = vunpack.c.h.bf16 %v1332_v40 }
 0x444   : > { %v909_v10 = vpack.c.bf16 %v905_v9, %v904_v8 }
 0x446   : > { %1437 = vmatmul.mubr.msk.bf16.gmra.mrb[4].mxu1 %vm817_vm4, %v909_v10 }
 0x511   : > { %v1434_v11 = vpop.f32.mrb[0].mxu1 }
 0x512   : > { %v960_v12 = vpop.f32.mrb[1].mxu1 }
 0x513   : > { %v1435_v13 = vpop.f32.mrb[2].mxu1 }
 0x514   : > { %v992_v14 = vpack.c.bf16 %v1435_v13, %v1434_v11  ;;  %v963_v15 = vpop.f32.mrb[3].mxu1 }
 0x515   : > { %v991_v16 = vpack.c.bf16 %v963_v15, %v960_v12 }
 0x517   : > { %1442 = vmatprep.mubr.msk.bf16.mxu1 %vm1003_vm5, %v991_v16 }
 0x518   : > { %1443 = vmatmul.mubr.msk.bf16.vlgmr.msra.gmra.mrb[8].mxu1 %vm1003_vm5, %v992_v14 }
 0x519   : > { %v1438_v17 = vpop.f32.mrb[4].mxu1 }
 0x51a   : > { %v976_v18 = vpop.f32.mrb[5].mxu1 }
 0x51b   : > { %v1439_v19 = vpop.f32.mrb[6].mxu1 }
 0x51c   : > { %v994_v20 = vpack.c.bf16 %v1439_v19, %v1438_v17  ;;  %v979_v21 = vpop.f32.mrb[7].mxu1 }
 0x51d   : > { %v993_v22 = vpack.c.bf16 %v979_v21, %v976_v18 }
 0x51f   : > { %1446 = vmatprep.mubr.msk.bf16.mxu1 %vm1003_vm5, %v993_v22 }
 0x520   : > { %1447 = vmatmul.mubr.msk.bf16.gmra.mrb[12].mxu1 %vm1003_vm5, %v994_v20 }
 0x5eb   : > { %v1444_v27 = vpop.f32.mrb[8].mxu1 }
 0x5ec   : > { %v1085_v29 = vmul.f32 %v1444_v27, %v1082_v25  ;;  %v1050_v30 = vpop.f32.mrb[9].mxu1 }
 0x5ed   : > { %v1083_v32 = vmul.f32 %v1082_v25, %v1050_v30  ;;  %v1445_v33 = vpop.f32.mrb[10].mxu1 }
 0x5ee   : > { %v1101_v35 = vadd.f32 %v1320_v26, %v1085_v29  ;;  %v1086_v36 = vmul.f32 %v1445_v33, %v1082_v25  ;;  %v1053_v37 = vpop.f32.mrb[11].mxu1 }
 0x5ef   : > { %v1099_v38 = vadd.f32 %v1316_v28, %v1083_v32  ;;  %v1084_v39 = vmul.f32 %v1082_v25, %v1053_v37 }
 0x5f0   : > { %1110 = vst.msk [vmem:[%s2130_s14 + $0x10] sm:$0xff] %vm1107_vm6, %v1101_v35  ;;  %v1102_v41 = vadd.f32 %v1321_v31, %v1086_v36 }
 0x5f1   : > { %1108 = vst.msk [vmem:[%s2130_s14] sm:$0xff] %vm1107_vm6, %v1099_v38  ;;  %v1100_v43 = vadd.f32 %v1317_v34, %v1084_v39 }
 0x5f2   : > { %1111 = vst.msk [vmem:[%s2130_s14 + $0x18] sm:$0xff] %vm1107_vm6, %v1102_v41 }
 0x5f3   : > { %1109 = vst.msk [vmem:[%s2130_s14 + $0x8] sm:$0xff] %vm1107_vm6, %v1100_v43  ;;  %v1448_v45 = vpop.f32.mrb[12].mxu1 }
 0x5f4   : > { %v1089_v47 = vmul.f32 %v1448_v45, %v1082_v25  ;;  %v1066_v48 = vpop.f32.mrb[13].mxu1 }
 0x5f5   : > { %v1087_v50 = vmul.f32 %v1082_v25, %v1066_v48  ;;  %v1449_v51 = vpop.f32.mrb[14].mxu1 }
 0x5f6   : > { %v1105_v53 = vadd.f32 %v1328_v44, %v1089_v47  ;;  %v1090_v54 = vmul.f32 %v1449_v51, %v1082_v25  ;;  %v1069_v55 = vpop.f32.mrb[15].mxu1 }
 0x5f7   : > { %v1103_v56 = vadd.f32 %v1324_v46, %v1087_v50  ;;  %v1088_v57 = vmul.f32 %v1082_v25, %v1069_v55 }
 0x5f8   : > { %1114 = vst.msk [vmem:[%s2130_s14 + $0x30] sm:$0xff] %vm1107_vm6, %v1105_v53  ;;  %v1106_v58 = vadd.f32 %v1329_v49, %v1090_v54 }
 0x5f9   : > { %1112 = vst.msk [vmem:[%s2130_s14 + $0x20] sm:$0xff] %vm1107_vm6, %v1103_v56  ;;  %v1104_v59 = vadd.f32 %v1325_v52, %v1088_v57 }
 0x5fa   : > { %1115 = vst.msk [vmem:[%s2130_s14 + $0x38] sm:$0xff] %vm1107_vm6, %v1106_v58 }
 0x5fb   : > { %1113 = vst.msk [vmem:[%s2130_s14 + $0x28] sm:$0xff] %vm1107_vm6, %v1104_v59 }
 0x5fc   : > { %1737 = shalt.err (!%p1734_p8)
}
 0x5fd   : > { %s1738_s24 = scalar_lea.hbm %s2279_s29, 1024  ;;  %s1742_s30 = scalar_lea.hbm %s2356_s4, 8192 }
 0x5fe   : > { %p1739_p12 = scmp.ne.s32.totalorder %s2279_s29, %s1738_s24  ;;  %p1743_p10 = scmp.lt.u32.totalorder %s2279_s29, %s2356_s4 }
 0x5ff   : > { %p1744_p1 = scmp.lt.u32.totalorder %s1742_s30, %s1738_s24  ;;  %p1746_p3 = scmp.lt.u32.totalorder %s1738_s24, %s2279_s29 }
 0x600   : > { %p1740_p2 = pnand %p1739_p12, %p2390_p7 }
 0x601   : > { %p1745_p4 = por %p1744_p1, %p1743_p10 }
 0x602   : > { %p1741_p6 = pneg %p1740_p2 }
 0x603   : > { %p1747_p13 = por %p1746_p3, %p1745_p4 }
 0x605   : > { %p1748_p9 = pnand %p1747_p13, %p1741_p6 }
 0x607   : > { %1751 = shalt.err (!%p1748_p9)
}
 0x608   : > { %s1860_s7 = smov 128   ;;  %s1861_s20 = smov 8  }
 0x609   : > { %1468 = dma.vmem_to_hbm [thread:$0]  (%p2390_p7), %s2281_s3, 1024, %s2279_s29, %s2291_s5, %s1860_s7, %s1860_s7, %s1861_s20  }
 0x60a PF: > { %s2391_s9 = sld [smem:[#allocation16_spill]]  ;;  %s2392_s23 = sld [smem:[#allocation18_spill]] }
 0x60b   : > { %p1490_p11 = scmp.ge.s32.totalorder %s1850_s26, 2 }
 0x610   : > { %s1147_s12 = sand.u32 1, %s2391_s9   ;;  %p2393_p0 = scmp.ne.s32.totalorder %s2392_s23, 0 }
 0x611   : > { %s1148_s8 = scalar_lea.sflag [#allocation8], %s1147_s12 }
 0x612   : > { %p1482_p5 = pnand %p1490_p11, %p2393_p0 }
 0x614   : > { %1805 = dma.done.wait (!%p1482_p5), %s1148_s8, 1024  }
 0x615   : > { %1807 = vsyncadd (!%p1482_p5), %s1148_s8, 4294966272  ;;  %s22_s26 = sadd.s32 1, %s1850_s26   ;;  %s2394_s23 = sld [smem:[#allocation17_spill]] }
 0x616   : > { %p19_p8 = scmp.ge.s32.totalorder %s22_s26, 10   ;;  %s2395_s24 = sld [smem:[#allocation19_spill]] }
 0x617   : > { %s2396_s17 = smov %s1814_s18  ;;  %s2397_s18 = smov %s1818_s19 }
 0x618   : > { %s2398_s19 = smov %s2071_s2  ;;  %s2399_s20 = smov %s1826_s21 }
 0x619   : > { %s2400_s21 = smov %s1830_s22  ;;  %s2401_s22 = smov %s2066_s15 }
 0x61a   : > { %s2402_s3 = smov %s1846_s25  ;;  %s2403_s25 = smov %s2409_s11 }
 0x61b   :  { %21 = sbr.rel (!%p19_p8) target bundleno = 14 (0xe), region = 95 }
 0x622   :  { %1153 = vsyncpa [#allocation7], 1 }
 0x623   :  { %1155 = vsyncpa [#allocation7 + $0x1], 1 }
 0x624   :  { %1156 = vsyncpa [#allocation10], 1 }
 0x625   :  { %1157 = vsyncpa [#allocation8], 1 }
 0x626   :  { %1159 = vsyncpa [#allocation8 + $0x1], 1 }

</bundles_post_ra>
